<compile_context>
chip_gen: v6e
topology: v6e:2x2x1
jax: 0.10.0
libtpu: 0.0.40
codegen_flags: <defaults>
</compile_context>

<pallas_src>
import jax
import jax.numpy as jnp
from jax.experimental import pallas as pl
from jax.experimental.pallas import tpu as pltpu

BN_EPS = 1e-5          # PyTorch BatchNorm1d default eps
K_IN = 784             # fc1 input features (unpadded)
H1 = 256
H2 = 128
OUT_LOGITS = 10        # logical fc3 output features
OUT_PAD = 128          # lane-padded fc3 output width


def net_kernel(x_ref,
               w1_ref, g1_ref, beta1_ref,
               w2_ref, bias2_ref, g2_ref, beta2_ref,
               w3_ref, bias3_ref,
               o_ref):
    """Whole MLP forward in one kernel invocation (no grid).

    Matmul operands are bf16 (MXU with f32 accumulation); BN / bias / ReLU
    math is f32. BatchNorm uses training-mode batch statistics.
    """
    # In-kernel cast: trivial VPU work, avoids a separate wrapper-side XLA op.
    x = x_ref[...].astype(jnp.bfloat16)                               # (N, 784) bf16

    # ---- fc1 (bias=False), f32 accumulation on the MXU ----
    h = jnp.dot(x, w1_ref[...], preferred_element_type=jnp.float32)   # (N, 256) f32

    # ---- bn1 folded into per-channel scale/shift (f32) + relu ----
    mu = jnp.mean(h, axis=0, keepdims=True)                           # (1, 256)
    var = jnp.mean((h - mu) ** 2, axis=0, keepdims=True)              # biased var
    scale = g1_ref[...] * jax.lax.rsqrt(var + BN_EPS)
    shift = beta1_ref[...] - mu * scale
    h = jnp.maximum(h * scale + shift, 0.0)

    # ---- fc2 (with bias) ----
    h = jnp.dot(h.astype(jnp.bfloat16), w2_ref[...],
                preferred_element_type=jnp.float32) + bias2_ref[...]   # (N, 128) f32

    # ---- bn2 folded + relu ----
    mu = jnp.mean(h, axis=0, keepdims=True)                           # (1, 128)
    var = jnp.mean((h - mu) ** 2, axis=0, keepdims=True)
    scale = g2_ref[...] * jax.lax.rsqrt(var + BN_EPS)
    shift = beta2_ref[...] - mu * scale
    h = jnp.maximum(h * scale + shift, 0.0)

    # ---- fc3 (with bias), lane-padded to 128 output columns (lane-dense vst) ----
    o_ref[...] = (jnp.dot(h.astype(jnp.bfloat16), w3_ref[...],
                          preferred_element_type=jnp.float32)
                  + bias3_ref[...]).astype(o_ref.dtype)                # (N, 128) f32


# Full-extent block living in VMEM (no grid, no index_map needed).
_VMEM_SPEC = pl.BlockSpec(memory_space=pltpu.MemorySpace.VMEM)


def net_forward(x_flat, params):
    """x_flat: (N, 784) float32. Returns logits (N, 10) float32."""
    (w1, g1, beta1, w2, bias2, g2, beta2, w3, bias3) = params
    N = x_flat.shape[0]

    args = (x_flat, w1, g1, beta1, w2, bias2, g2, beta2, w3, bias3)

    out_padded = pl.pallas_call(
        net_kernel,
        out_shape=jax.ShapeDtypeStruct((N, OUT_PAD), jnp.float32),
        in_specs=[_VMEM_SPEC] * len(args),
        out_specs=_VMEM_SPEC,
    )(*args)

    # Padded columns are exactly zero (zero weight columns + zero bias).
    # Single slice kept only at the final API boundary; a fused consumer
    # (argmax / loss) could take the padded (N, 128) output directly instead.
    return out_padded[:, :OUT_LOGITS]


def init_params(key):
    """Deterministic synthetic parameters, PyTorch shapes transposed to (in, out).

    Weights are bf16 (MXU operands); BN params and biases stay f32.
    w1 is unpadded (784, 256); w3/bias3 are zero-padded on the output axis
    (10 -> 128) so the kernel's final store is lane-dense.
    """
    ks = jax.random.split(key, 5)

    # fc1: PyTorch weight (256, 784), bias=False  -> stored as (784, 256) bf16
    w1 = (jax.random.normal(ks[0], (K_IN, H1), jnp.float32) * 0.05).astype(jnp.bfloat16)

    # bn1: gamma=1, beta=0 (PyTorch defaults), broadcast rows, f32
    g1 = jnp.ones((1, H1), jnp.float32)
    beta1 = jnp.zeros((1, H1), jnp.float32)

    # fc2: (128, 256) -> (256, 128) bf16, bias (1, 128) f32
    w2 = (jax.random.normal(ks[1], (H1, H2), jnp.float32) * 0.05).astype(jnp.bfloat16)
    bias2 = jax.random.normal(ks[2], (1, H2), jnp.float32) * 0.01

    # bn2
    g2 = jnp.ones((1, H2), jnp.float32)
    beta2 = jnp.zeros((1, H2), jnp.float32)

    # fc3: (10, 128) -> (128, 10) -> lane-padded to (128, 128) bf16, bias (1, 128) f32
    w3 = jax.random.normal(ks[3], (H2, OUT_LOGITS), jnp.float32) * 0.05
    w3 = jnp.pad(w3, ((0, 0), (0, OUT_PAD - OUT_LOGITS))).astype(jnp.bfloat16)
    bias3 = jax.random.normal(ks[4], (1, OUT_LOGITS), jnp.float32) * 0.01
    bias3 = jnp.pad(bias3, ((0, 0), (0, OUT_PAD - OUT_LOGITS)))

    return (w1, g1, beta1, w2, bias2, g2, beta2, w3, bias3)


if __name__ == "__main__":
    key = jax.random.PRNGKey(0)
    pkey, xkey = jax.random.split(key)

    params = init_params(pkey)

    # Input like MNIST: (N, 1, 28, 28); torch.flatten(x, 1) -> (N, 784).
    # N kept small for the demo; throughput scales near-linearly with N up to
    # hundreds of rows with no change to this single-shot kernel.
    N = 8
    x = jax.random.normal(xkey, (N, 1, 28, 28), jnp.float32)
    x_flat = x.reshape(N, -1)  # metadata-only reshape outside the kernel

    out = net_forward(x_flat, params)
    out = jax.block_until_ready(out)

    assert out.shape == (N, OUT_LOGITS) and out.dtype == jnp.float32
    print("KERNEL_OK")
</pallas_src>

<mosaic_0001>
module attributes {stable_mosaic.version = 11 : i64} {
  func.func @net_kernel(%arg0: memref<8x784xf32, #tpu.memory_space<vmem>>, %arg1: memref<784x256xbf16, #tpu.memory_space<vmem>>, %arg2: memref<1x256xf32, #tpu.memory_space<vmem>>, %arg3: memref<1x256xf32, #tpu.memory_space<vmem>>, %arg4: memref<256x128xbf16, #tpu.memory_space<vmem>>, %arg5: memref<1x128xf32, #tpu.memory_space<vmem>>, %arg6: memref<1x128xf32, #tpu.memory_space<vmem>>, %arg7: memref<1x128xf32, #tpu.memory_space<vmem>>, %arg8: memref<128x128xbf16, #tpu.memory_space<vmem>>, %arg9: memref<1x128xf32, #tpu.memory_space<vmem>>, %arg10: memref<8x128xf32, #tpu.memory_space<vmem>>) attributes {dimension_semantics = [], scalar_prefetch = 0 : i64, scratch_operands = 0 : i64, tpu.core_type = #tpu.core_type<tc>} {
    %c0 = arith.constant 0 : index
    %c0_0 = arith.constant 0 : index
    %0 = vector.load %arg0[%c0, %c0_0] : memref<8x784xf32, #tpu.memory_space<vmem>>, vector<8x784xf32>
    %1 = arith.truncf %0 : vector<8x784xf32> to vector<8x784xbf16>
    %c0_1 = arith.constant 0 : index
    %c0_2 = arith.constant 0 : index
    %2 = vector.load %arg1[%c0_1, %c0_2] : memref<784x256xbf16, #tpu.memory_space<vmem>>, vector<784x256xbf16>
    %cst = arith.constant dense<0.000000e+00> : vector<8x256xf32>
    %3 = tpu.matmul %1, %2, %cst {dimension_numbers = #tpu.dot_dimension_numbers<[1], [0], [0], [1], [0, 0, 1, 1], [], []>} : vector<8x784xbf16>, vector<784x256xbf16>, vector<8x256xf32> -> vector<8x256xf32>
    %cst_3 = arith.constant dense<0.000000e+00> : vector<256xf32>
    %4 = vector.multi_reduction <add>, %3, %cst_3 [0] : vector<8x256xf32> to vector<256xf32>
    %5 = vector.shape_cast %4 : vector<256xf32> to vector<1x256xf32>
    %cst_4 = arith.constant 8.000000e+00 : f32
    %6 = vector.broadcast %cst_4 : f32 to vector<1x256xf32>
    %7 = arith.divf %5, %6 : vector<1x256xf32>
    %8 = vector.broadcast %7 : vector<1x256xf32> to vector<8x256xf32>
    %9 = arith.subf %3, %8 : vector<8x256xf32>
    %10 = arith.mulf %9, %9 : vector<8x256xf32>
    %cst_5 = arith.constant dense<0.000000e+00> : vector<256xf32>
    %11 = vector.multi_reduction <add>, %10, %cst_5 [0] : vector<8x256xf32> to vector<256xf32>
    %12 = vector.shape_cast %11 : vector<256xf32> to vector<1x256xf32>
    %cst_6 = arith.constant 8.000000e+00 : f32
    %13 = vector.broadcast %cst_6 : f32 to vector<1x256xf32>
    %14 = arith.divf %12, %13 : vector<1x256xf32>
    %c0_7 = arith.constant 0 : index
    %c0_8 = arith.constant 0 : index
    %15 = vector.load %arg2[%c0_7, %c0_8] : memref<1x256xf32, #tpu.memory_space<vmem>>, vector<1x256xf32>
    %cst_9 = arith.constant 9.99999974E-6 : f32
    %16 = vector.broadcast %cst_9 : f32 to vector<1x256xf32>
    %17 = arith.addf %14, %16 : vector<1x256xf32>
    %18 = math.rsqrt %17 : vector<1x256xf32>
    %19 = arith.mulf %15, %18 : vector<1x256xf32>
    %c0_10 = arith.constant 0 : index
    %c0_11 = arith.constant 0 : index
    %20 = vector.load %arg3[%c0_10, %c0_11] : memref<1x256xf32, #tpu.memory_space<vmem>>, vector<1x256xf32>
    %21 = arith.mulf %7, %19 : vector<1x256xf32>
    %22 = arith.subf %20, %21 : vector<1x256xf32>
    %23 = vector.broadcast %19 : vector<1x256xf32> to vector<8x256xf32>
    %24 = arith.mulf %3, %23 : vector<8x256xf32>
    %25 = vector.broadcast %22 : vector<1x256xf32> to vector<8x256xf32>
    %26 = arith.addf %24, %25 : vector<8x256xf32>
    %cst_12 = arith.constant 0.000000e+00 : f32
    %27 = vector.broadcast %cst_12 : f32 to vector<8x256xf32>
    %28 = arith.maximumf %26, %27 : vector<8x256xf32>
    %29 = arith.truncf %28 : vector<8x256xf32> to vector<8x256xbf16>
    %c0_13 = arith.constant 0 : index
    %c0_14 = arith.constant 0 : index
    %30 = vector.load %arg4[%c0_13, %c0_14] : memref<256x128xbf16, #tpu.memory_space<vmem>>, vector<256x128xbf16>
    %cst_15 = arith.constant dense<0.000000e+00> : vector<8x128xf32>
    %31 = tpu.matmul %29, %30, %cst_15 {dimension_numbers = #tpu.dot_dimension_numbers<[1], [0], [0], [1], [0, 0, 1, 1], [], []>} : vector<8x256xbf16>, vector<256x128xbf16>, vector<8x128xf32> -> vector<8x128xf32>
    %c0_16 = arith.constant 0 : index
    %c0_17 = arith.constant 0 : index
    %32 = vector.load %arg5[%c0_16, %c0_17] : memref<1x128xf32, #tpu.memory_space<vmem>>, vector<1x128xf32>
    %33 = vector.broadcast %32 : vector<1x128xf32> to vector<8x128xf32>
    %34 = arith.addf %31, %33 : vector<8x128xf32>
    %cst_18 = arith.constant dense<0.000000e+00> : vector<128xf32>
    %35 = vector.multi_reduction <add>, %34, %cst_18 [0] : vector<8x128xf32> to vector<128xf32>
    %36 = vector.shape_cast %35 : vector<128xf32> to vector<1x128xf32>
    %cst_19 = arith.constant 8.000000e+00 : f32
    %37 = vector.broadcast %cst_19 : f32 to vector<1x128xf32>
    %38 = arith.divf %36, %37 : vector<1x128xf32>
    %39 = vector.broadcast %38 : vector<1x128xf32> to vector<8x128xf32>
    %40 = arith.subf %34, %39 : vector<8x128xf32>
    %41 = arith.mulf %40, %40 : vector<8x128xf32>
    %cst_20 = arith.constant dense<0.000000e+00> : vector<128xf32>
    %42 = vector.multi_reduction <add>, %41, %cst_20 [0] : vector<8x128xf32> to vector<128xf32>
    %43 = vector.shape_cast %42 : vector<128xf32> to vector<1x128xf32>
    %cst_21 = arith.constant 8.000000e+00 : f32
    %44 = vector.broadcast %cst_21 : f32 to vector<1x128xf32>
    %45 = arith.divf %43, %44 : vector<1x128xf32>
    %c0_22 = arith.constant 0 : index
    %c0_23 = arith.constant 0 : index
    %46 = vector.load %arg6[%c0_22, %c0_23] : memref<1x128xf32, #tpu.memory_space<vmem>>, vector<1x128xf32>
    %cst_24 = arith.constant 9.99999974E-6 : f32
    %47 = vector.broadcast %cst_24 : f32 to vector<1x128xf32>
    %48 = arith.addf %45, %47 : vector<1x128xf32>
    %49 = math.rsqrt %48 : vector<1x128xf32>
    %50 = arith.mulf %46, %49 : vector<1x128xf32>
    %c0_25 = arith.constant 0 : index
    %c0_26 = arith.constant 0 : index
    %51 = vector.load %arg7[%c0_25, %c0_26] : memref<1x128xf32, #tpu.memory_space<vmem>>, vector<1x128xf32>
    %52 = arith.mulf %38, %50 : vector<1x128xf32>
    %53 = arith.subf %51, %52 : vector<1x128xf32>
    %54 = vector.broadcast %50 : vector<1x128xf32> to vector<8x128xf32>
    %55 = arith.mulf %34, %54 : vector<8x128xf32>
    %56 = vector.broadcast %53 : vector<1x128xf32> to vector<8x128xf32>
    %57 = arith.addf %55, %56 : vector<8x128xf32>
    %cst_27 = arith.constant 0.000000e+00 : f32
    %58 = vector.broadcast %cst_27 : f32 to vector<8x128xf32>
    %59 = arith.maximumf %57, %58 : vector<8x128xf32>
    %60 = arith.truncf %59 : vector<8x128xf32> to vector<8x128xbf16>
    %c0_28 = arith.constant 0 : index
    %c0_29 = arith.constant 0 : index
    %61 = vector.load %arg8[%c0_28, %c0_29] : memref<128x128xbf16, #tpu.memory_space<vmem>>, vector<128x128xbf16>
    %cst_30 = arith.constant dense<0.000000e+00> : vector<8x128xf32>
    %62 = tpu.matmul %60, %61, %cst_30 {dimension_numbers = #tpu.dot_dimension_numbers<[1], [0], [0], [1], [0, 0, 1, 1], [], []>} : vector<8x128xbf16>, vector<128x128xbf16>, vector<8x128xf32> -> vector<8x128xf32>
    %c0_31 = arith.constant 0 : index
    %c0_32 = arith.constant 0 : index
    %63 = vector.load %arg9[%c0_31, %c0_32] : memref<1x128xf32, #tpu.memory_space<vmem>>, vector<1x128xf32>
    %64 = vector.broadcast %63 : vector<1x128xf32> to vector<8x128xf32>
    %65 = arith.addf %62, %64 : vector<8x128xf32>
    %c0_33 = arith.constant 0 : index
    %c0_34 = arith.constant 0 : index
    %66 = vector.load %arg10[%c0_33, %c0_34] : memref<8x128xf32, #tpu.memory_space<vmem>>, vector<8x128xf32>
    tpu.vector_store %arg10[%c0_33, %c0_34], %65 {strides = array<i32>} : memref<8x128xf32, #tpu.memory_space<vmem>>, vector<8x128xf32>,
    return
  }
}

</mosaic_0001>

<bundles_post_ra>
// kernel: tpu_custom_call.1
= control target key start
LH: loop header
LB: loop body
LE: loop exit
PB: predicated region body
PF: predicated region fallthrough
CT: control target
= control target key end

     0   :  { %15 = vsyncpa [#allocation3], 0  ;;  %s1894_s0 = inlined_call_operand.hbm [shape: f32[8,784], index: 0, kind: input, shape index: {}]   ;;  %s1895_s1 = inlined_call_operand.hbm [shape: bf16[784,256], index: 1, kind: input, shape index: {}]   ;;  %s1896_s2 = inlined_call_operand.vmem [shape: f32[1,256], index: 2, kind: input, shape index: {}]   ;;  %s1897_s3 = inlined_call_operand.vmem [shape: f32[1,256], index: 3, kind: input, shape index: {}]   ;;  %s1898_s4 = inlined_call_operand.hbm [shape: bf16[256,128], index: 4, kind: input, shape index: {}]   ;;  %s1899_s5 = inlined_call_operand.vmem [shape: f32[1,128], index: 5, kind: input, shape index: {}]   ;;  %s1900_s6 = inlined_call_operand.vmem [shape: f32[1,128], index: 6, kind: input, shape index: {}]   ;;  %s1901_s7 = inlined_call_operand.vmem [shape: f32[1,128], index: 7, kind: input, shape index: {}]   ;;  %s1902_s8 = inlined_call_operand.hbm [shape: bf16[128,128], index: 8, kind: input, shape index: {}]   ;;  %s1903_s9 = inlined_call_operand.vmem [shape: f32[1,128], index: 9, kind: input, shape index: {}]   ;;  %s1904_s10 = inlined_call_operand.hbm [shape: f32[8,128], index: 10, kind: output, shape index: {}]  }
   0x1   :  { %16 = vsyncpa [#allocation6], 0 }
   0x2   :  { %17 = vsyncpa [#allocation9], 0 }
   0x3   :  { %18 = vsyncpa [#allocation4], 0  ;;  %s1786_s13 = smov [#allocation5]  }
   0x4   :  { %s34_s14 = sshll.u32 %s1786_s13, 4  ;;  %s35_s14 = int_to_ptr.vmem [resolvable:$true] %s34_s14 }
   0x5   :  { %s1686_s15 = scalar_lea.vmem %s35_s14, 12544  ;;  %p1691_p1 = scmp.lt.s32.totalorder %s35_s14, %s35_s14 }
   0x6   :  { %p1687_p0 = scmp.ne.s32.totalorder %s35_s14, %s1686_s15  ;;  %p1692_p2 = scmp.lt.s32.totalorder %s1686_s15, %s1686_s15 }
   0x8   :  { %p1693_p3 = por %p1692_p2, %p1691_p1 }
   0xa   :  { %p1694_p4 = pnand %p1693_p3, %p1687_p0 }
   0xc   :  { %1697 = shalt.err (!%p1694_p4)
}
   0xd   :  { %s1787_s16 = smov 128   ;;  %s1788_s17 = smov 8  }
   0xe   :  { %40 = dma.hbm_to_vmem [thread:$0]  %s1895_s1, 12544, %s35_s14, [#allocation6], %s1787_s16, %s1787_s16, %s1788_s17  }
   0xf   :  { %s1789_s20 = smov [#allocation2]   ;;  %s1790_s22 = smov [#allocation7]  }
  0x10   :  { %s25_s21 = sshll.u32 %s1789_s20, 4  ;;  %s50_s23 = sshll.u32 %s1790_s22, 4  ;;  %s26_s21 = int_to_ptr.vmem [resolvable:$true] %s25_s21  ;;  %s51_s23 = int_to_ptr.vmem [resolvable:$true] %s50_s23 }
  0x11   :  { %s1706_s24 = scalar_lea.vmem %s26_s21, 896  ;;  %p1711_p6 = scmp.lt.s32.totalorder %s26_s21, %s26_s21 }
  0x12   :  { %p1707_p5 = scmp.ne.s32.totalorder %s26_s21, %s1706_s24  ;;  %p1712_p7 = scmp.lt.s32.totalorder %s1706_s24, %s1706_s24 }
  0x14   :  { %p1713_p8 = por %p1712_p7, %p1711_p6 }
  0x16   :  { %p1714_p9 = pnand %p1713_p8, %p1707_p5 }
  0x18   :  { %1717 = shalt.err (!%p1714_p9)
}
  0x19   :  { %28 = dma.hbm_to_vmem [thread:$0]  %s1894_s0, 896, %s26_s21, [#allocation3]  }
  0x1a   :  { %s1726_s27 = scalar_lea.vmem %s51_s23, 2048  ;;  %p1731_p11 = scmp.lt.s32.totalorder %s51_s23, %s51_s23 }
  0x1b   :  { %p1727_p10 = scmp.ne.s32.totalorder %s51_s23, %s1726_s27  ;;  %p1732_p12 = scmp.lt.s32.totalorder %s1726_s27, %s1726_s27 }
  0x1d   :  { %p1733_p13 = por %p1732_p12, %p1731_p11 }
  0x1f   :  { %p1734_p0 = pnand %p1733_p13, %p1727_p10 }
  0x21   :  { %1737 = shalt.err (!%p1734_p0)
}
  0x22   :  { %s1791_s1 = smov 64   ;;  %s1792_s28 = smov 4  }
  0x23   :  { %56 = dma.hbm_to_vmem [thread:$0]  %s1898_s4, 2048, %s51_s23, [#allocation6], %s1791_s1, %s1791_s1, %s1792_s28  }
  0x24   :  { %s1793_s11 = smov [#allocation8]  }
  0x25   :  { %s68_s12 = sshll.u32 %s1793_s11, 4  ;;  %s69_s12 = int_to_ptr.vmem [resolvable:$true] %s68_s12 }
  0x26   :  { %s1746_s13 = scalar_lea.vmem %s69_s12, 1024  ;;  %p1751_p2 = scmp.lt.s32.totalorder %s69_s12, %s69_s12 }
  0x27   :  { %p1747_p1 = scmp.ne.s32.totalorder %s69_s12, %s1746_s13  ;;  %p1752_p3 = scmp.lt.s32.totalorder %s1746_s13, %s1746_s13 }
  0x29   :  { %p1753_p4 = por %p1752_p3, %p1751_p2 }
  0x2b   :  { %p1754_p5 = pnand %p1753_p4, %p1747_p1 }
  0x2d   :  { %1757 = shalt.err (!%p1754_p5)
}
  0x2e   :  { %74 = dma.hbm_to_vmem [thread:$0]  %s1902_s8, 1024, %s69_s12, [#allocation9], %s1791_s1, %s1791_s1, %s1792_s28  }
  0x2f   :  { %1778 = dma.done.wait [#allocation3], 896  }
  0x30   :  { %1779 = vsyncadd [#allocation3], 4294966400 }
  0x31   :  { %1780 = dma.done.wait [#allocation6], 14592  }
  0x32   :  { %1781 = vsyncadd [#allocation6], 4294952704 }
  0x33   :  { %1782 = dma.done.wait [#allocation9], 1024  }
  0x34   :  { %1783 = vsyncadd [#allocation9], 4294966272  ;;  %v1501_v0 = vld [vmem:[#allocation5 + $0x74] ss:$8 sps:$4 sm:$0xff]   ;;  %v1505_v2 = vld [vmem:[#allocation5 + $0x70] ss:$8 sps:$4 sm:$0xff]  }
  0x35   :  { %v1503_v1 = vld [vmem:[#allocation5 + $0x174] ss:$8 sps:$4 sm:$0xff]   ;;  %696 = vmatprep.subr.bf16.mxu0 %v1501_v0  ;;  %v1506_v3 = vld [vmem:[#allocation5 + $0x170] ss:$8 sps:$4 sm:$0xff]   ;;  %v1507_v4 = vld [vmem:[#allocation5 + $0x64] ss:$8 sps:$4 sm:$0xff]  }
  0x36   :  { %737 = vmatprep.subr.bf16.mxu1 %v1503_v1  ;;  %697 = vmatpush1.bf16.msra.mxu0 %v1505_v2  ;;  %v1509_v5 = vld [vmem:[#allocation5 + $0x164] ss:$8 sps:$4 sm:$0xff]   ;;  %v1511_v6 = vld [vmem:[#allocation5 + $0x60] ss:$8 sps:$4 sm:$0xff]   ;;  %v1513_v8 = vld [vmem:[#allocation5 + $0x54] ss:$8 sps:$4 sm:$0xff]  }
  0x37   :  { %738 = vmatpush1.bf16.msra.mxu1 %v1506_v3  ;;  %698 = vmatprep.subr.bf16.mxu0 %v1507_v4  ;;  %v1512_v7 = vld [vmem:[#allocation5 + $0x160] ss:$8 sps:$4 sm:$0xff]   ;;  %v1515_v9 = vld [vmem:[#allocation5 + $0x154] ss:$8 sps:$4 sm:$0xff]   ;;  %v1517_v10 = vld [vmem:[#allocation5 + $0x50] ss:$8 sps:$4 sm:$0xff]  }
  0x38   :  { %739 = vmatprep.subr.bf16.mxu1 %v1509_v5  ;;  %v1518_v11 = vld [vmem:[#allocation5 + $0x150] ss:$8 sps:$4 sm:$0xff]   ;;  %v1519_v12 = vld [vmem:[#allocation5 + $0x44] ss:$8 sps:$4 sm:$0xff]   ;;  %v1523_v14 = vld [vmem:[#allocation5 + $0x40] ss:$8 sps:$4 sm:$0xff]  }
  0x39   :  { %v1521_v13 = vld [vmem:[#allocation5 + $0x144] ss:$8 sps:$4 sm:$0xff]   ;;  %v1524_v15 = vld [vmem:[#allocation5 + $0x140] ss:$8 sps:$4 sm:$0xff]   ;;  %v1525_v16 = vld [vmem:[#allocation5 + $0x34] ss:$8 sps:$4 sm:$0xff]  }
  0x3a   :  { %699 = vmatpush1.bf16.msra.mxu0 %v1511_v6  ;;  %v1527_v17 = vld [vmem:[#allocation5 + $0x134] ss:$8 sps:$4 sm:$0xff]   ;;  %v1529_v18 = vld [vmem:[#allocation5 + $0x30] ss:$8 sps:$4 sm:$0xff]   ;;  %v1531_v20 = vld [vmem:[#allocation5 + $0x24] ss:$8 sps:$4 sm:$0xff]  }
  0x3b   :  { %740 = vmatpush1.bf16.msra.mxu1 %v1512_v7  ;;  %700 = vmatprep.subr.bf16.mxu0 %v1513_v8  ;;  %v1530_v19 = vld [vmem:[#allocation5 + $0x130] ss:$8 sps:$4 sm:$0xff]   ;;  %v1533_v21 = vld [vmem:[#allocation5 + $0x124] ss:$8 sps:$4 sm:$0xff]   ;;  %v1535_v22 = vld [vmem:[#allocation5 + $0x20] ss:$8 sps:$4 sm:$0xff]  }
  0x3c   :  { %741 = vmatprep.subr.bf16.mxu1 %v1515_v9  ;;  %v1536_v23 = vld [vmem:[#allocation5 + $0x120] ss:$8 sps:$4 sm:$0xff]   ;;  %v1537_v24 = vld [vmem:[#allocation5 + $0x14] ss:$8 sps:$4 sm:$0xff]   ;;  %v1541_v26 = vld [vmem:[#allocation5 + $0x10] ss:$8 sps:$4 sm:$0xff]  }
  0x3d   :  { %v1539_v25 = vld [vmem:[#allocation5 + $0x114] ss:$8 sps:$4 sm:$0xff]   ;;  %v1542_v27 = vld [vmem:[#allocation5 + $0x110] ss:$8 sps:$4 sm:$0xff]   ;;  %v1543_v28 = vld [vmem:[#allocation5 + $0x4] ss:$8 sps:$4 sm:$0xff]  }
  0x3e   :  { %701 = vmatpush1.bf16.msra.mxu0 %v1517_v10  ;;  %v1545_v29 = vld [vmem:[#allocation5 + $0x104] ss:$8 sps:$4 sm:$0xff]   ;;  %v1547_v30 = vld [vmem:[#allocation5] ss:$8 sps:$4 sm:$0xff]   ;;  %v1549_v32 = vld [vmem:[#allocation5 + $0xf4] ss:$8 sps:$4 sm:$0xff]  }
  0x3f   :  { %742 = vmatpush1.bf16.msra.mxu1 %v1518_v11  ;;  %702 = vmatprep.subr.bf16.mxu0 %v1519_v12  ;;  %v1548_v31 = vld [vmem:[#allocation5 + $0x100] ss:$8 sps:$4 sm:$0xff]   ;;  %v1551_v33 = vld [vmem:[#allocation5 + $0x1f4] ss:$8 sps:$4 sm:$0xff]   ;;  %v1553_v34 = vld [vmem:[#allocation5 + $0xf0] ss:$8 sps:$4 sm:$0xff]  }
  0x40   :  { %743 = vmatprep.subr.bf16.mxu1 %v1521_v13  ;;  %v1554_v35 = vld [vmem:[#allocation5 + $0x1f0] ss:$8 sps:$4 sm:$0xff]   ;;  %v1555_v36 = vld [vmem:[#allocation5 + $0xe4] ss:$8 sps:$4 sm:$0xff]   ;;  %v1559_v38 = vld [vmem:[#allocation5 + $0xe0] ss:$8 sps:$4 sm:$0xff]  }
  0x41   :  { %v1557_v37 = vld [vmem:[#allocation5 + $0x1e4] ss:$8 sps:$4 sm:$0xff]   ;;  %v1560_v39 = vld [vmem:[#allocation5 + $0x1e0] ss:$8 sps:$4 sm:$0xff]   ;;  %v1561_v40 = vld [vmem:[#allocation5 + $0xd4] ss:$8 sps:$4 sm:$0xff]  }
  0x42   :  { %703 = vmatpush1.bf16.msra.mxu0 %v1523_v14  ;;  %v1563_v41 = vld [vmem:[#allocation5 + $0x1d4] ss:$8 sps:$4 sm:$0xff]   ;;  %v1565_v42 = vld [vmem:[#allocation5 + $0xd0] ss:$8 sps:$4 sm:$0xff]   ;;  %v1567_v44 = vld [vmem:[#allocation5 + $0xc4] ss:$8 sps:$4 sm:$0xff]  }
  0x43   :  { %744 = vmatpush1.bf16.msra.mxu1 %v1524_v15  ;;  %704 = vmatprep.subr.bf16.mxu0 %v1525_v16  ;;  %v1566_v43 = vld [vmem:[#allocation5 + $0x1d0] ss:$8 sps:$4 sm:$0xff]   ;;  %v1569_v45 = vld [vmem:[#allocation5 + $0x1c4] ss:$8 sps:$4 sm:$0xff]   ;;  %v1571_v47 = vld [vmem:[#allocation5 + $0xc0] ss:$8 sps:$4 sm:$0xff]  }
  0x44   :  { %745 = vmatprep.subr.bf16.mxu1 %v1527_v17  ;;  %v91_v46 = vld [vmem:[#allocation2 + $0x8] sm:$0xff]  ;;  %v1572_v48 = vld [vmem:[#allocation5 + $0x1c0] ss:$8 sps:$4 sm:$0xff]   ;;  %v1579_v56 = vld [vmem:[#allocation5 + $0xa4] ss:$8 sps:$4 sm:$0xff]   ;;  %vm692_vm0 = vcmask 130048  }
  0x45   :  { %v98_v49 = vpack.c.bf16 %v91_v46, %v91_v46  ;;  %v93_v50 = vld [vmem:[#allocation2 + $0x18] sm:$0xff]  ;;  %v1573_v51 = vld [vmem:[#allocation5 + $0xb4] ss:$8 sps:$4 sm:$0xff]   ;;  %v1577_v54 = vld [vmem:[#allocation5 + $0xb0] ss:$8 sps:$4 sm:$0xff]   ;;  %vm1797_vm1 = vmmov 0  }
  0x46   :  { %705 = vmatpush1.bf16.msra.mxu0 %v1529_v18  ;;  %v100_v52 = vpack.c.bf16 %v93_v50, %v93_v50  ;;  %v1575_v53 = vld [vmem:[#allocation5 + $0x1b4] ss:$8 sps:$4 sm:$0xff]   ;;  %v1578_v55 = vld [vmem:[#allocation5 + $0x1b0] ss:$8 sps:$4 sm:$0xff]   ;;  %v1581_v57 = vld [vmem:[#allocation5 + $0x1a4] ss:$8 sps:$4 sm:$0xff]  }
  0x47   :  { %746 = vmatpush1.bf16.msra.mxu1 %v1530_v19  ;;  %706 = vmatprep.subr.bf16.mxu0 %v1531_v20  ;;  %v1583_v58 = vld [vmem:[#allocation5 + $0xa0] ss:$8 sps:$4 sm:$0xff]   ;;  %v1585_v60 = vld [vmem:[#allocation5 + $0x94] ss:$8 sps:$4 sm:$0xff]   ;;  %v1589_v62 = vld [vmem:[#allocation5 + $0x90] ss:$8 sps:$4 sm:$0xff]  }
  0x48   :  { %747 = vmatprep.subr.bf16.mxu1 %v1533_v21  ;;  %728 = vmatprep.mubr.bf16.mxu0 %v98_v49  ;;  %v1584_v59 = vld [vmem:[#allocation5 + $0x1a0] ss:$8 sps:$4 sm:$0xff]   ;;  %v1587_v61 = vld [vmem:[#allocation5 + $0x194] ss:$8 sps:$4 sm:$0xff]   ;;  %v1590_v63 = vld [vmem:[#allocation5 + $0x190] ss:$8 sps:$4 sm:$0xff]  }
  0x49   :  { %769 = vmatprep.mubr.bf16.mxu1 %v100_v52  ;;  %v1591_v0 = vld [vmem:[#allocation5 + $0x84] ss:$8 sps:$4 sm:$0xff]   ;;  %v1595_v2 = vld [vmem:[#allocation5 + $0x80] ss:$8 sps:$4 sm:$0xff]   ;;  %v92_v5 = vld [vmem:[#allocation2 + $0x10] sm:$0xff]  ;;  %v1794_v19 = vmov 0  }
  0x4a   :  { %707 = vmatpush1.bf16.msra.mxu0 %v1535_v22  ;;  %v1593_v1 = vld [vmem:[#allocation5 + $0x184] ss:$8 sps:$4 sm:$0xff]   ;;  %v1596_v3 = vld [vmem:[#allocation5 + $0x180] ss:$8 sps:$4 sm:$0xff]   ;;  %v1599_v6 = vld [vmem:[#allocation5 + $0x274] ss:$8 sps:$4 sm:$0xff]   ;;  %v99_v8 = vpack.c.bf16 %v92_v5, %v92_v5 }
  0x4b   :  { %748 = vmatpush1.bf16.msra.mxu1 %v1536_v23  ;;  %708 = vmatprep.subr.bf16.mxu0 %v1537_v24  ;;  %v90_v4 = vld [vmem:[#allocation2] sm:$0xff]  ;;  %v1597_v9 = vld [vmem:[#allocation5 + $0x270] ss:$8 sps:$4 sm:$0xff]   ;;  %v1605_v14 = vld [vmem:[#allocation5 + $0x254] ss:$8 sps:$4 sm:$0xff]  }
  0x4c   :  { %749 = vmatprep.subr.bf16.mxu1 %v1539_v25  ;;  %v97_v7 = vpack.c.bf16 %v90_v4, %v90_v4  ;;  %v1602_v10 = vld [vmem:[#allocation5 + $0x264] ss:$8 sps:$4 sm:$0xff]   ;;  %v1642_v11 = vld [vmem:[#allocation5 + $0x300] ss:$8 sps:$4 sm:$0xff]   ;;  %v96_v15 = vld [vmem:[#allocation2 + $0x30] sm:$0xff] }
  0x4d   :  { %v1644_v12 = vld [vmem:[#allocation5 + $0x304] ss:$8 sps:$4 sm:$0xff]   ;;  %v1600_v13 = vld [vmem:[#allocation5 + $0x260] ss:$8 sps:$4 sm:$0xff]   ;;  %v95_v16 = vld [vmem:[#allocation2 + $0x28] sm:$0xff]  ;;  %v103_v21 = vpack.c.bf16 %v96_v15, %v96_v15 }
  0x4e   :  { %709 = vmatpush1.bf16.msra.mxu0 %v1541_v26  ;;  %v102_v17 = vpack.c.bf16 %v95_v16, %v95_v16  ;;  %v1603_v18 = vld [vmem:[#allocation5 + $0x250] ss:$8 sps:$4 sm:$0xff]   ;;  %v1608_v20 = vld [vmem:[#allocation5 + $0x244] ss:$8 sps:$4 sm:$0xff]   ;;  %v1606_v22 = vld [vmem:[#allocation5 + $0x240] ss:$8 sps:$4 sm:$0xff]  }
  0x4f   :  { %750 = vmatpush1.bf16.msra.mxu1 %v1542_v27  ;;  %710 = vmatprep.subr.bf16.mxu0 %v1543_v28  ;;  %v1611_v23 = vld [vmem:[#allocation5 + $0x234] ss:$8 sps:$4 sm:$0xff]   ;;  %v1609_v24 = vld [vmem:[#allocation5 + $0x230] ss:$8 sps:$4 sm:$0xff]   ;;  %v1614_v25 = vld [vmem:[#allocation5 + $0x224] ss:$8 sps:$4 sm:$0xff]  }
  0x50   :  { %751 = vmatprep.subr.bf16.mxu1 %v1545_v29  ;;  %v1612_v26 = vld [vmem:[#allocation5 + $0x220] ss:$8 sps:$4 sm:$0xff]   ;;  %v1617_v27 = vld [vmem:[#allocation5 + $0x214] ss:$8 sps:$4 sm:$0xff]   ;;  %v1615_v28 = vld [vmem:[#allocation5 + $0x210] ss:$8 sps:$4 sm:$0xff]  }
  0x51   :  { %v1620_v29 = vld [vmem:[#allocation5 + $0x204] ss:$8 sps:$4 sm:$0xff]   ;;  %v1645_v46 = vld [vmem:[#allocation5 + $0x280] ss:$8 sps:$4 sm:$0xff]  }
  0x52   :  { %711 = vmatpush1.bf16.msra.mxu0 %v1547_v30  ;;  %v1618_v30 = vld [vmem:[#allocation5 + $0x200] ss:$8 sps:$4 sm:$0xff]  }
  0x53   :  { %752 = vmatpush1.bf16.msra.mxu1 %v1548_v31  ;;  %712 = vmatprep.subr.bf16.mxu0 %v1549_v32  ;;  %v1623_v31 = vld [vmem:[#allocation5 + $0x2f4] ss:$8 sps:$4 sm:$0xff]   ;;  %v1621_v32 = vld [vmem:[#allocation5 + $0x2f0] ss:$8 sps:$4 sm:$0xff]   ;;  %v1648_v49 = vld [vmem:[#allocation7 + $0x78] sm:$0xff]  }
  0x54   :  { %753 = vmatprep.subr.bf16.mxu1 %v1551_v33  ;;  %v1626_v33 = vld [vmem:[#allocation5 + $0x2e4] ss:$8 sps:$4 sm:$0xff]  }
  0x55   :  { %v1649_v50 = vld [vmem:[#allocation7 + $0x38] sm:$0xff]   ;;  %v1651_v52 = vld [vmem:[#allocation7 + $0x30] sm:$0xff]  }
  0x56   :  { %713 = vmatpush2.bf16.msra.mxu0 %v1553_v34  ;;  %v1624_v34 = vld [vmem:[#allocation5 + $0x2e0] ss:$8 sps:$4 sm:$0xff]  }
  0x57   :  { %754 = vmatpush2.bf16.msra.mxu1 %v1554_v35  ;;  %714 = vmatprep.subr.bf16.mxu0 %v1555_v36  ;;  %v1629_v35 = vld [vmem:[#allocation5 + $0x2d4] ss:$8 sps:$4 sm:$0xff]   ;;  %v1627_v36 = vld [vmem:[#allocation5 + $0x2d0] ss:$8 sps:$4 sm:$0xff]  }
  0x58   :  { %755 = vmatprep.subr.bf16.mxu1 %v1557_v37  ;;  %v1632_v37 = vld [vmem:[#allocation5 + $0x2c4] ss:$8 sps:$4 sm:$0xff]  }
  0x5a   :  { %715 = vmatpush2.bf16.msra.mxu0 %v1559_v38  ;;  %v1630_v38 = vld [vmem:[#allocation5 + $0x2c0] ss:$8 sps:$4 sm:$0xff]  }
  0x5b   :  { %756 = vmatpush2.bf16.msra.mxu1 %v1560_v39  ;;  %716 = vmatprep.subr.bf16.mxu0 %v1561_v40  ;;  %v1635_v39 = vld [vmem:[#allocation5 + $0x2b4] ss:$8 sps:$4 sm:$0xff]   ;;  %v1633_v40 = vld [vmem:[#allocation5 + $0x2b0] ss:$8 sps:$4 sm:$0xff]  }
  0x5c   :  { %757 = vmatprep.subr.bf16.mxu1 %v1563_v41  ;;  %v1638_v41 = vld [vmem:[#allocation5 + $0x2a4] ss:$8 sps:$4 sm:$0xff]  }
  0x5e   :  { %717 = vmatpush2.bf16.msra.mxu0 %v1565_v42  ;;  %v1636_v42 = vld [vmem:[#allocation5 + $0x2a0] ss:$8 sps:$4 sm:$0xff]  }
  0x5f   :  { %758 = vmatpush2.bf16.msra.mxu1 %v1566_v43  ;;  %718 = vmatprep.subr.bf16.mxu0 %v1567_v44  ;;  %v1641_v43 = vld [vmem:[#allocation5 + $0x294] ss:$8 sps:$4 sm:$0xff]   ;;  %v1639_v44 = vld [vmem:[#allocation5 + $0x290] ss:$8 sps:$4 sm:$0xff]  }
  0x60   :  { %759 = vmatprep.subr.bf16.mxu1 %v1569_v45  ;;  %v1647_v45 = vld [vmem:[#allocation5 + $0x284] ss:$8 sps:$4 sm:$0xff]  }
  0x62   :  { %719 = vmatpush2.bf16.msra.mxu0 %v1571_v47  ;;  %v94_v47 = vld [vmem:[#allocation2 + $0x20] sm:$0xff] }
  0x63   :  { %760 = vmatpush2.bf16.msra.mxu1 %v1572_v48  ;;  %720 = vmatprep.subr.bf16.mxu0 %v1573_v51  ;;  %v101_v48 = vpack.c.bf16 %v94_v47, %v94_v47  ;;  %v1650_v51 = vld [vmem:[#allocation7 + $0x70] sm:$0xff]  }
  0x64   :  { %761 = vmatprep.subr.bf16.mxu1 %v1575_v53  ;;  %v1652_v53 = vld [vmem:[#allocation7 + $0x68] sm:$0xff]  }
  0x66   :  { %721 = vmatpush2.bf16.msra.mxu0 %v1577_v54  ;;  %v1653_v54 = vld [vmem:[#allocation7 + $0x28] sm:$0xff]  }
  0x67   :  { %762 = vmatpush2.bf16.msra.mxu1 %v1578_v55  ;;  %722 = vmatprep.subr.bf16.mxu0 %v1579_v56  ;;  %v1654_v55 = vld [vmem:[#allocation7 + $0x60] sm:$0xff]  }
  0x68   :  { %763 = vmatprep.subr.bf16.mxu1 %v1581_v57  ;;  %v1655_v56 = vld [vmem:[#allocation7 + $0x20] sm:$0xff]   ;;  %v1656_v57 = vld [vmem:[#allocation7 + $0x58] sm:$0xff]  }
  0x6a   :  { %723 = vmatpush2.bf16.msra.mxu0 %v1583_v58  ;;  %v1657_v58 = vld [vmem:[#allocation7 + $0x18] sm:$0xff]  }
  0x6b   :  { %764 = vmatpush2.bf16.msra.mxu1 %v1584_v59  ;;  %724 = vmatprep.subr.bf16.mxu0 %v1585_v60  ;;  %v1658_v59 = vld [vmem:[#allocation7 + $0x50] sm:$0xff]  }
  0x6c   :  { %765 = vmatprep.subr.bf16.mxu1 %v1587_v61  ;;  %v1659_v60 = vld [vmem:[#allocation7 + $0x10] sm:$0xff]   ;;  %v1660_v61 = vld [vmem:[#allocation7 + $0x48] sm:$0xff]  }
  0x6e   :  { %725 = vmatpush2.bf16.msra.mxu0 %v1589_v62 }
  0x6f   :  { %766 = vmatpush2.bf16.msra.mxu1 %v1590_v63  ;;  %726 = vmatprep.subr.bf16.mxu0 %v1591_v0  ;;  %v1661_v0 = vld [vmem:[#allocation7 + $0x8] sm:$0xff]  }
  0x70   :  { %767 = vmatprep.subr.bf16.mxu1 %v1593_v1 }
  0x72   :  { %727 = vmatpush2.bf16.msra.mxu0 %v1595_v2  ;;  %v1662_v2 = vld [vmem:[#allocation7 + $0x40] sm:$0xff]  }
  0x73   :  { %768 = vmatpush2.bf16.msra.mxu1 %v1596_v3  ;;  %778 = vmatprep.subr.bf16.mxu0 %v1599_v6 }
  0x74   :  { %833 = vmatprep.subr.bf16.mxu1 %v1644_v12 }
  0x75   :  { %729 = vmatmul.mubr.bf16.vlgmr.msra.gmra.mxu0 %v97_v7  ;;  %v1663_v7 = vld [vmem:[#allocation7] sm:$0xff]  }
  0x76   :  { %770 = vmatmul.mubr.bf16.vlgmr.msra.gmra.mxu1 %v99_v8  ;;  %779 = vmatpush1.bf16.msra.mxu0 %v1597_v9 }
  0x77   :  { %780 = vmatprep.subr.bf16.mxu0 %v1602_v10  ;;  %834 = vmatpush1.bf16.msra.mxu1 %v1642_v11 }
  0x78   :  { %851 = vmatprep.mubr.bf16.mxu1 %v1794_v19  ;;  %810 = vmatprep.mubr.bf16.mxu0 %v102_v17 }
  0x79   :  { %1437 = vmatprep.subr.bf16.mxu1 %v1648_v49 }
  0x7a   :  { %781 = vmatpush1.bf16.msra.mxu0 %v1600_v13 }
  0x7b   :  { %782 = vmatprep.subr.bf16.mxu0 %v1605_v14 }
  0x7e   :  { %1410 = vmatmul.mubr.msk.bf16.vlgmr.msra.gmra.mxu1 %vm692_vm0, %v103_v21  ;;  %783 = vmatpush1.bf16.msra.mxu0 %v1603_v18 }
  0x7f   :  { %784 = vmatprep.subr.bf16.mxu0 %v1608_v20  ;;  %1438 = vmatpush3.bf16.msra.mxu1 %v1649_v50 }
  0x80   :  { %1439 = vmatprep.subr.bf16.mxu1 %v1650_v51 }
  0x82   :  { %785 = vmatpush1.bf16.msra.mxu0 %v1606_v22 }
  0x83   :  { %786 = vmatprep.subr.bf16.mxu0 %v1611_v23  ;;  %1440 = vmatpush3.bf16.msra.mxu1 %v1651_v52 }
  0x84   :  { %1441 = vmatprep.subr.bf16.mxu1 %v1652_v53 }
  0x86   :  { %787 = vmatpush1.bf16.msra.mxu0 %v1609_v24 }
  0x87   :  { %788 = vmatprep.subr.bf16.mxu0 %v1614_v25  ;;  %1442 = vmatpush3.bf16.msra.mxu1 %v1653_v54 }
  0x88   :  { %1443 = vmatprep.subr.bf16.mxu1 %v1654_v55 }
  0x8a   :  { %789 = vmatpush1.bf16.msra.mxu0 %v1612_v26 }
  0x8b   :  { %790 = vmatprep.subr.bf16.mxu0 %v1617_v27  ;;  %1444 = vmatpush3.bf16.msra.mxu1 %v1655_v56 }
  0x8c   :  { %1445 = vmatprep.subr.bf16.mxu1 %v1656_v57  ;;  %v1795_v57 = vmov 1966171168  }
  0x8e   :  { %791 = vmatpush1.bf16.msra.mxu0 %v1615_v28 }
  0x8f   :  { %792 = vmatprep.subr.bf16.mxu0 %v1620_v29  ;;  %1446 = vmatpush3.bf16.msra.mxu1 %v1657_v58  ;;  %v902_v58 = vunpack.c.l.s4 %v1795_v57 }
  0x90   :  { %1447 = vmatprep.subr.bf16.mxu1 %v1658_v59  ;;  %v904_v59 = vlaneseq }
  0x92   :  { %793 = vmatpush1.bf16.msra.mxu0 %v1618_v30 }
  0x93   :  { %794 = vmatprep.subr.bf16.mxu0 %v1623_v31  ;;  %1448 = vmatpush3.bf16.msra.mxu1 %v1659_v60  ;;  %v903_v60 = vunpack.c.0.s8 %v902_v58 }
  0x94   :  { %1449 = vmatprep.subr.bf16.mxu1 %v1660_v61  ;;  %v905_v61 = vshrl.u32 %v904_v59, 7 }
  0x96   :  { %795 = vmatpush2.bf16.msra.mxu0 %v1621_v32 }
  0x97   :  { %796 = vmatprep.subr.bf16.mxu0 %v1626_v33  ;;  %1450 = vmatpush3.bf16.msra.mxu1 %v1661_v0 }
  0x98   :  { %1451 = vmatprep.subr.bf16.mxu1 %v1662_v2 }
  0x9a   :  { %797 = vmatpush2.bf16.msra.mxu0 %v1624_v34 }
  0x9b   :  { %798 = vmatprep.subr.bf16.mxu0 %v1629_v35  ;;  %1452 = vmatpush3.bf16.msra.mxu1 %v1663_v7 }
  0x9e   :  { %799 = vmatpush2.bf16.msra.mxu0 %v1627_v36 }
  0x9f   :  { %800 = vmatprep.subr.bf16.mxu0 %v1632_v37 }
  0xa2   :  { %801 = vmatpush2.bf16.msra.mxu0 %v1630_v38 }
  0xa3   :  { %802 = vmatprep.subr.bf16.mxu0 %v1635_v39 }
  0xa6   :  { %803 = vmatpush2.bf16.msra.mxu0 %v1633_v40 }
  0xa7   :  { %804 = vmatprep.subr.bf16.mxu0 %v1638_v41 }
  0xaa   :  { %805 = vmatpush2.bf16.msra.mxu0 %v1636_v42 }
  0xab   :  { %806 = vmatprep.subr.bf16.mxu0 %v1641_v43 }
  0xae   :  { %807 = vmatpush2.bf16.msra.mxu0 %v1639_v44 }
  0xaf   :  { %808 = vmatprep.subr.bf16.mxu0 %v1647_v45 }
  0xb2   :  { %809 = vmatpush2.bf16.msra.mxu0 %v1645_v46 }
  0xb5   :  { %811 = vmatmul.mubr.bf16.vlgmr.msra.gmra.mxu0 %v101_v48 }
 0x135   :  { %v730_v62 = vpop.f32.mrf.mxu0 }
 0x136   :  { %v771_v63 = vpop.f32.mrf.mxu1 }
 0x137   :  { %v772_v1 = vadd.f32 %v771_v63, %v730_v62  ;;  %v732_v3 = vpop.f32.mrf.mxu0  ;;  %v906_v63 = vsub.s32 %v903_v60, %v905_v61  ;;  %v1160_v60 = vld [vmem:[%s1900_s6] sm:$0x1]  ;;  %s1798_s6 = smov [#allocation10]  }
 0x138   :  { %v773_v4 = vpop.f32.mrf.mxu1  ;;  %s1301_s22 = sshll.u32 %s1798_s6, 4  ;;  %s1302_s22 = int_to_ptr.vmem [resolvable:$true] %s1301_s22 }
 0x139   :  { %v734_v5 = vpop.f32.mrf.mxu0  ;;  %v774_v15 = vadd.f32 %v773_v4, %v732_v3  ;;  %v893_v3 = vld [vmem:[%s1896_s2] sm:$0x3]  ;;  %p1763_p7 = scmp.lt.s32.totalorder %s1302_s22, %s1302_s22 }
 0x13a   :  { %v775_v6 = vpop.f32.mrf.mxu1  ;;  %v1870_v5 = vsub.s32 0, %v905_v61 }
 0x13b   :  { %v735_v8 = vpop.f32.mrf.mxu0  ;;  %v925_v6 = vsub.s32 1, %v905_v61 }
 0x13c   :  { %v776_v9 = vpop.f32.mrf.mxu1 }
 0x13e   :  { %v853_v10 = vpop.f32.mrf.mxu1 }
 0x140   :  { %v855_v11 = vpop.f32.mrf.mxu1 }
 0x142   :  { %v857_v12 = vpop.f32.mrf.mxu1 }
 0x144   :  { %v858_v13 = vpop.f32.mrf.mxu1 }
 0x175   :  { %v812_v14 = vpop.f32.mrf.mxu0 }
 0x176   :  { %v813_v16 = vadd.f32 %v812_v14, %v772_v1 }
 0x177   :  { %v814_v17 = vpop.f32.mrf.mxu0 }
 0x178   :  { %v854_v18 = vadd.f32 %v853_v10, %v813_v16  ;;  %v815_v19 = vadd.f32 %v814_v17, %v774_v15  ;;  %v917_v16 = vld [vmem:[%s1897_s3] sm:$0x3] }
 0x179   :  { %v816_v20 = vpop.f32.mrf.mxu0 }
 0x17a   :  { %v860_v21 = vrot.slane %v854_v18, 4  ;;  %v856_v22 = vadd.f32 %v855_v11, %v815_v19 }
 0x17b   :  { %v817_v23 = vpop.f32.mrf.mxu0 }
 0x17c   :  { %v861_v24 = vadd.f32 %v860_v21, %v854_v18  ;;  %v866_v25 = vrot.slane %v856_v22, 4 }
 0x17e   :  { %v862_v26 = vrot.slane %v861_v24, 2  ;;  %v867_v27 = vadd.f32 %v866_v25, %v856_v22 }
 0x180   :  { %v863_v28 = vadd.f32 %v862_v26, %v861_v24  ;;  %v868_v29 = vrot.slane %v867_v27, 2 }
 0x182   :  { %v864_v30 = vrot.slane %v863_v28, 1  ;;  %v869_v31 = vadd.f32 %v868_v29, %v867_v27  ;;  %v1665_v29 = vld [vmem:[#allocation8 + $0x30] sm:$0xff]  }
 0x184   :  { %v865_v32 = vadd.f32 %v864_v30, %v863_v28  ;;  %v870_v33 = vrot.slane %v869_v31, 1  ;;  %v1666_v30 = vld [vmem:[#allocation8 + $0x28] sm:$0xff]  }
 0x186   :  { %v873_v34 = vmul.f32 0.125, %v865_v32  ;;  %v871_v35 = vadd.f32 %v870_v33, %v869_v31  ;;  %v1667_v31 = vld [vmem:[#allocation8 + $0x20] sm:$0xff]   ;;  %v1668_v32 = vld [vmem:[#allocation8 + $0x18] sm:$0xff]   ;;  %v1669_v33 = vld [vmem:[#allocation8 + $0x10] sm:$0xff]  }
 0x188   :  { %v875_v36 = vsub.f32 %v854_v18, %v873_v34  ;;  %v874_v37 = vmul.f32 0.125, %v871_v35  ;;  %v1671_v35 = vld [vmem:[#allocation8] sm:$0xff]  }
 0x18a   :  { %v877_v38 = vmul.f32 %v875_v36, %v875_v36  ;;  %v876_v39 = vsub.f32 %v856_v22, %v874_v37 }
 0x18c   :  { %v879_v40 = vrot.slane %v877_v38, 4  ;;  %v878_v41 = vmul.f32 %v876_v39, %v876_v39 }
 0x18e   :  { %v880_v42 = vadd.f32 %v879_v40, %v877_v38  ;;  %v885_v43 = vrot.slane %v878_v41, 4 }
 0x190   :  { %v881_v44 = vrot.slane %v880_v42, 2  ;;  %v886_v45 = vadd.f32 %v885_v43, %v878_v41 }
 0x192   :  { %v882_v46 = vadd.f32 %v881_v44, %v880_v42  ;;  %v887_v47 = vrot.slane %v886_v45, 2 }
 0x194   :  { %v883_v48 = vrot.slane %v882_v46, 1  ;;  %v888_v49 = vadd.f32 %v887_v47, %v886_v45 }
 0x196   :  { %v884_v50 = vadd.f32 %v883_v48, %v882_v46  ;;  %v889_v51 = vrot.slane %v888_v49, 1 }
 0x198   :  { %v891_v52 = vmul.f32 0.125, %v884_v50  ;;  %v890_v53 = vadd.f32 %v889_v51, %v888_v49 }
 0x19a   :  { %v894_v54 = vadd.f32 1e-05, %v891_v52  ;;  %v892_v55 = vmul.f32 0.125, %v890_v53 }
 0x19c   :  { %v895_v56 = vadd.f32 1e-05, %v892_v55  ;;  %1672 = vrsqrt.f32 %v894_v54 }
 0x19e   :  { %1674 = vrsqrt.f32 %v895_v56 }
 0x1a9   :  { %v1673_v62 = vpop.eup %1672 }
 0x1ab   :  { %v1675_v0 = vpop.eup %1674 }
 0x1ac   :  { %v900_v1 = vcombine.low %v1673_v62, %v1675_v0 }
 0x1ae   :  { %v907_v2 = vrot.slane %v900_v1, %v906_v63 }
 0x1b0   :  { %v914_v4 = vrot.slane %v907_v2, %v906_v63 }
 0x1b2   :  { %v916_v7 = vmul.f32 %v914_v4, %v893_v3 }
 0x1b4   :  { %v922_v8 = vrot.slane %v916_v7, %v1870_v5  ;;  %v926_v9 = vrot.slane %v916_v7, %v925_v6 }
 0x1b6   :  { %v929_v10 = vmul.f32 %v922_v8, %v873_v34  ;;  %v930_v11 = vmul.f32 %v926_v9, %v874_v37  ;;  %v951_v12 = vmul.f32 %v926_v9, %v856_v22  ;;  %v950_v13 = vmul.f32 %v922_v8, %v854_v18  ;;  %v1664_v18 = vld [vmem:[#allocation8 + $0x38] sm:$0xff]   ;;  %v1670_v34 = vld [vmem:[#allocation8 + $0x8] sm:$0xff]  }
 0x1b7   :  { %v1796_v22 = vmov 0.0   ;;  %v1411_v37 = vld [vmem:[%s1899_s5] ss:$0 sm:$0xff] }
 0x1b8   :  { %v933_v14 = vcombine.low %v929_v10, %v930_v11  ;;  %1468 = vmatprep.subr.bf16.mxu1 %v1796_v22  ;;  %v1428_v9 = vld [vmem:[%s1903_s9] ss:$0 sm:$0xff] }
 0x1ba   :  { %v940_v15 = vrot.slane %v933_v14, %v906_v63 }
 0x1bc   :  { %v947_v17 = vrot.slane %v940_v15, %v906_v63  ;;  %v1164_v63 = vld [vmem:[%s1901_s7] sm:$0x1]  ;;  %s1758_s7 = scalar_lea.vmem %s1302_s22, 128 }
 0x1bd   :  { %p1759_p6 = scmp.ne.s32.totalorder %s1302_s22, %s1758_s7  ;;  %p1764_p8 = scmp.lt.s32.totalorder %s1758_s7, %s1758_s7 }
 0x1be   :  { %v949_v19 = vsub.f32 %v917_v16, %v947_v17 }
 0x1bf   :  { %p1765_p9 = por %p1764_p8, %p1763_p7 }
 0x1c0   :  { %v960_v20 = vrot.slane %v949_v19, %v925_v6  ;;  %v956_v21 = vrot.slane %v949_v19, %v1870_v5 }
 0x1c1   :  { %p1766_p10 = pnand %p1765_p9, %p1759_p6 }
 0x1c2   :  { %v964_v23 = vadd.f32 %v960_v20, %v951_v12  ;;  %v963_v24 = vadd.f32 %v956_v21, %v950_v13 }
 0x1c4   :  { %v966_v25 = vmax.f32 %v964_v23, 0.0  ;;  %v965_v26 = vmax.f32 %v963_v24, 0.0 }
 0x1c6   :  { %v968_v27 = vpack.c.bf16 %v966_v25, %v966_v25  ;;  %v967_v28 = vpack.c.bf16 %v965_v26, %v965_v26 }
 0x1c8   :  { %1136 = vmatprep.mubr.bf16.mxu1 %v968_v27 }
 0x1c9   :  { %1137 = vmatmul.mubr.bf16.vlgmr.msra.gmra.mxu1 %v967_v28 }
 0x1ca   :  { %1469 = vmatpush3.bf16.msra.mxu1 %v1664_v18  ;;  %1484 = vmatprep.mubr.msk.bf16.mxu1 %vm1797_vm1, %v1796_v22 }
 0x1cb   :  { %1470 = vmatprep.subr.bf16.mxu1 %v1796_v22 }
 0x1ce   :  { %1471 = vmatpush3.bf16.msra.mxu1 %v1665_v29 }
 0x1cf   :  { %1472 = vmatprep.subr.bf16.mxu1 %v1796_v22 }
 0x1d2   :  { %1473 = vmatpush3.bf16.msra.mxu1 %v1666_v30 }
 0x1d3   :  { %1474 = vmatprep.subr.bf16.mxu1 %v1796_v22 }
 0x1d6   :  { %1475 = vmatpush3.bf16.msra.mxu1 %v1667_v31 }
 0x1d7   :  { %1476 = vmatprep.subr.bf16.mxu1 %v1796_v22 }
 0x1da   :  { %1477 = vmatpush3.bf16.msra.mxu1 %v1668_v32 }
 0x1db   :  { %1478 = vmatprep.subr.bf16.mxu1 %v1796_v22 }
 0x1de   :  { %1479 = vmatpush3.bf16.msra.mxu1 %v1669_v33 }
 0x1df   :  { %1480 = vmatprep.subr.bf16.mxu1 %v1796_v22 }
 0x1e2   :  { %1481 = vmatpush3.bf16.msra.mxu1 %v1670_v34 }
 0x1e3   :  { %1482 = vmatprep.subr.bf16.mxu1 %v1796_v22 }
 0x1e6   :  { %1483 = vmatpush3.bf16.msra.mxu1 %v1671_v35 }
 0x289   :  { %v1453_v36 = vpop.f32.mrf.mxu1 }
 0x28b   :  { %v1454_v38 = vpop.f32.mrf.mxu1 }
 0x28c   :  { %v1455_v39 = vadd.f32 %v1454_v38, %v1453_v36 }
 0x28d   :  { %v1456_v40 = vpop.f32.mrf.mxu1 }
 0x28e   :  { %v1139_v41 = vadd.f32 %v1455_v39, %v1411_v37 }
 0x28f   :  { %v1457_v42 = vpop.f32.mrf.mxu1 }
 0x290   :  { %v1144_v43 = vrot.slane %v1139_v41, 4 }
 0x292   :  { %v1145_v44 = vadd.f32 %v1144_v43, %v1139_v41 }
 0x294   :  { %v1146_v45 = vrot.slane %v1145_v44, 2 }
 0x296   :  { %v1147_v46 = vadd.f32 %v1146_v45, %v1145_v44 }
 0x298   :  { %v1148_v47 = vrot.slane %v1147_v46, 1 }
 0x29a   :  { %v1149_v48 = vadd.f32 %v1148_v47, %v1147_v46 }
 0x29c   :  { %v1150_v49 = vmul.f32 0.125, %v1149_v48 }
 0x29e   :  { %v1151_v50 = vsub.f32 %v1139_v41, %v1150_v49 }
 0x2a0   :  { %v1152_v51 = vmul.f32 %v1151_v50, %v1151_v50 }
 0x2a2   :  { %v1153_v52 = vrot.slane %v1152_v51, 4 }
 0x2a4   :  { %v1154_v53 = vadd.f32 %v1153_v52, %v1152_v51 }
 0x2a6   :  { %v1155_v54 = vrot.slane %v1154_v53, 2 }
 0x2a8   :  { %v1156_v55 = vadd.f32 %v1155_v54, %v1154_v53 }
 0x2aa   :  { %v1157_v56 = vrot.slane %v1156_v55, 1 }
 0x2ac   :  { %v1158_v57 = vadd.f32 %v1157_v56, %v1156_v55 }
 0x2ae   :  { %v1159_v58 = vmul.f32 0.125, %v1158_v57 }
 0x2b0   :  { %v1161_v59 = vadd.f32 1e-05, %v1159_v58 }
 0x2b2   :  { %1676 = vrsqrt.f32 %v1161_v59 }
 0x2bf   :  { %v1677_v61 = vpop.eup %1676 }
 0x2c0   :  { %v1163_v62 = vmul.f32 %v1677_v61, %v1160_v60 }
 0x2c2   :  { %v1165_v0 = vmul.f32 %v1163_v62, %v1150_v49  ;;  %v1171_v1 = vrot.slane %v1163_v62, %v1870_v5 }
 0x2c4   :  { %v1166_v2 = vsub.f32 %v1164_v63, %v1165_v0  ;;  %v1173_v3 = vmul.f32 %v1171_v1, %v1139_v41 }
 0x2c6   :  { %v1178_v4 = vrot.slane %v1166_v2, %v1870_v5 }
 0x2c8   :  { %v1180_v6 = vadd.f32 %v1178_v4, %v1173_v3 }
 0x2ca   :  { %v1181_v7 = vmax.f32 %v1180_v6, 0.0 }
 0x2cc   :  { %v1182_v8 = vpack.c.bf16 %v1181_v7, %v1181_v7 }
 0x2ce   :  { %1485 = vmatmul.mubr.bf16.vlgmr.msra.gmra.mxu1 %v1182_v8 }
 0x38e   :  { %v1288_v10 = vpop.f32.mrf.mxu1 }
 0x38f   :  { %v1289_v11 = vadd.f32 %v1428_v9, %v1288_v10 }
 0x390   :  { %v1486_v12 = vpop.f32.mrf.mxu1 }
 0x391   :  { %1294 = vst [vmem:[#allocation10] sm:$0xff] %v1289_v11 }
 0x392   :  { %v1291_v13 = vpop.f32.mrf.mxu1 }
 0x393   :  { %1769 = shalt.err (!%p1766_p10)
}
 0x394   :  { %1304 = dma.vmem_to_hbm [thread:$0]  %s1302_s22, 128, %s1904_s10, [#allocation4]   ;;  %v1487_v5 = vpop.f32.mrf.mxu1 }
 0x395   :  { %1784 = dma.done.wait [#allocation4], 128  }
 0x396   :  { %1785 = vsyncadd [#allocation4], 4294967168 }
 0x397   :  { %1308 = vsyncpa [#allocation3], 1 }
 0x398   :  { %1309 = vsyncpa [#allocation6], 1 }
 0x399   :  { %1310 = vsyncpa [#allocation9], 1 }
 0x39a   :  { %1311 = vsyncpa [#allocation4], 1 }

</bundles_post_ra>
